<compile_context>
chip_gen: v6e
topology: v6e:2x2x1
jax: 0.10.0
libtpu: 0.0.40
codegen_flags: <defaults>
</compile_context>

<pallas_src>
import math

import jax
import jax.numpy as jnp
from jax.experimental import pallas as pl
from jax.experimental.pallas import tpu as pltpu

LEAKY_SLOPE = 0.01      # torch.nn.LeakyReLU default
LANE = 128
MAX_TILE_B = 2048       # ~1 MB x/out tile (f32, 128 lanes) -> far under any VMEM limit
MIN_SPLIT_ROWS = 512    # once batch reaches this, force >=2 grid steps (v7x megacore)


def _round_up(x, m):
    return ((x + m - 1) // m) * m


def _sublane(dtype):
    # Native sublane tile quantum: 8 rows for 32-bit, 16 rows for 16-bit (bf16) dtypes.
    return 16 if jnp.dtype(dtype).itemsize == 2 else 8


def _make_mlp_kernel(n_layers):
    """Fused MLP kernel: refs = (x, W1, b1, W2, b2, ..., Wn, bn, out)."""

    def kernel(*refs):
        x_ref = refs[0]
        o_ref = refs[-1]
        h = x_ref[...]
        for i in range(n_layers):
            w = refs[1 + 2 * i][...]
            b = refs[2 + 2 * i][...]  # (1, fo) f32, broadcast over rows
            # Cast activations to the weight (compute) dtype so bf16 operands hit the MXU
            # fast path; accumulation stays f32 via preferred_element_type.
            h = jnp.dot(h.astype(w.dtype), w, preferred_element_type=jnp.float32) + b
            if i < n_layers - 1:  # LeakyReLU between layers only (not after the last)
                h = jnp.maximum(h, LEAKY_SLOPE * h)
        o_ref[...] = h.astype(o_ref.dtype)

    return kernel


def init_dqn_params(layer_sizes, key):
    """Deterministic PyTorch-style (uniform +-1/sqrt(fan_in)) init."""
    params = []
    for i in range(len(layer_sizes) - 1):
        fan_in, fan_out = layer_sizes[i], layer_sizes[i + 1]
        bound = 1.0 / math.sqrt(fan_in)
        key, kw, kb = jax.random.split(key, 3)
        w = jax.random.uniform(kw, (fan_in, fan_out), jnp.float32, -bound, bound)
        b = jax.random.uniform(kb, (1, fan_out), jnp.float32, -bound, bound)
        params.append((w, b))
    return params


def prepare_dqn_params(params, compute_dtype=jnp.float32):
    """Pad/cast parameters ONCE (hoisted out of the forward path).

    Layout decisions (all zero-padded -> exact math, padded activations stay 0):
      * layer 0 keeps its K dim unpadded (matches the unpadded x on the wire),
      * hidden output dims are padded to 128 lanes (lane-dense matmuls/vregs),
      * the LAST layer keeps its N dim unpadded so the kernel writes only the useful
        out_dim lanes to HBM (kills the 16x output write amplification).
    """
    n = len(params)
    prepared = []
    prev = params[0][0].shape[0]  # in_dim, unpadded
    for i, (w, b) in enumerate(params):
        fi, fo = w.shape
        fo_p = fo if i == n - 1 else _round_up(fo, LANE)
        wp = (jnp.zeros((prev, fo_p), compute_dtype)
              .at[:fi, :fo].set(w.astype(compute_dtype)))
        bp = jnp.zeros((1, fo_p), jnp.float32).at[:, :fo].set(b.reshape(1, -1))
        prepared.append((wp, bp))
        prev = fo_p
    return prepared


def _choose_batch_tiling(batch, sublane):
    """Pick (tile_b, batch_p, n_steps): minimal row padding, big tiles, >=2 steps when large."""
    batch_aligned = _round_up(batch, sublane)
    n_steps = max(1, -(-batch_aligned // MAX_TILE_B))
    if batch_aligned >= MIN_SPLIT_ROWS and n_steps < 2:
        n_steps = 2  # guarantee both v7x TensorCores get work
    tile_b = _round_up(-(-batch_aligned // n_steps), sublane)
    batch_p = n_steps * tile_b
    return tile_b, batch_p, n_steps


def dqn_forward(obs, prepared_params, state=None, interpret=False):
    """Equivalent of DQN.forward: returns (logits, state).

    `prepared_params` comes from prepare_dqn_params (f32 default; pass
    compute_dtype=jnp.bfloat16 there for the bf16-on-the-wire fast path).
    """
    compute_dtype = prepared_params[0][0].dtype
    sublane = _sublane(compute_dtype)
    batch = obs.shape[0]
    x = obs.reshape(batch, -1).astype(compute_dtype)  # obs.view(batch, -1)
    in_dim = x.shape[1]
    out_dim = prepared_params[-1][0].shape[1]
    n_layers = len(prepared_params)

    tile_b, batch_p, n_steps = _choose_batch_tiling(batch, sublane)
    if batch_p != batch:
        x = jnp.pad(x, ((0, batch_p - batch), (0, 0)))

    # x / out are tiled over the batch grid; every weight/bias block index is constant
    # (0, 0) -> VMEM-resident across all grid steps (no re-DMA).
    in_specs = [pl.BlockSpec((tile_b, in_dim), lambda i: (i, 0))]
    flat = []
    for wp, bp in prepared_params:
        flat.extend([wp, bp])
        in_specs.append(pl.BlockSpec(wp.shape, lambda i: (0, 0)))
        in_specs.append(pl.BlockSpec(bp.shape, lambda i: (0, 0)))
    out_spec = pl.BlockSpec((tile_b, out_dim), lambda i: (i, 0))

    flops = 2 * batch_p * sum(w.shape[0] * w.shape[1] for w, _ in prepared_params)
    bytes_accessed = (
        x.size * x.dtype.itemsize
        + sum(w.size * w.dtype.itemsize + b.size * b.dtype.itemsize
              for w, b in prepared_params)
        + batch_p * out_dim * 4
    )

    logits_p = pl.pallas_call(
        _make_mlp_kernel(n_layers),
        out_shape=jax.ShapeDtypeStruct((batch_p, out_dim), jnp.float32),
        grid=(n_steps,),
        in_specs=in_specs,
        out_specs=out_spec,
        compiler_params=pltpu.CompilerParams(
            dimension_semantics=("parallel",),  # megacore-shard batch tiles
        ),
        cost_estimate=pl.CostEstimate(
            flops=flops, transcendentals=0, bytes_accessed=bytes_accessed
        ),
        interpret=interpret,
    )(x, *flat)

    logits = logits_p if batch_p == batch else logits_p[:batch]
    return logits, state


def dqn_forward_ref(obs, params, state=None):
    """Pure-JAX reference (unpadded f32 params) for correctness check."""
    batch = obs.shape[0]
    h = obs.reshape(batch, -1).astype(jnp.float32)
    n = len(params)
    for i, (w, b) in enumerate(params):
        h = h @ w + b
        if i < n - 1:
            h = jnp.where(h >= 0, h, LEAKY_SLOPE * h)
    return h, state


if __name__ == "__main__":
    key = jax.random.PRNGKey(0)
    k_obs, k_params = jax.random.split(key)

    # Small shapes consistent with the module: obs (batch=2, 4, 16) -> flattened feature
    # dim 64; layer_sizes = [64, 32, 32, 8] (two hidden layers, 8 actions).
    layer_sizes = [64, 32, 32, 8]
    obs = jax.random.normal(k_obs, (2, 4, 16), dtype=jnp.float32)
    params = init_dqn_params(layer_sizes, k_params)
    ref_logits, _ = dqn_forward_ref(obs, params, state=None)

    # --- Default f32 path: bit-for-bit PyTorch-equivalent semantics. ---
    prepared_f32 = prepare_dqn_params(params, compute_dtype=jnp.float32)
    logits, state = dqn_forward(obs, prepared_f32, state=None)
    logits = jax.block_until_ready(logits)
    assert logits.shape == (2, layer_sizes[-1])
    assert jnp.allclose(logits, ref_logits, atol=1e-5, rtol=1e-5), "f32 mismatch vs reference"

    # --- bf16-on-the-wire path (halved HBM traffic; f32 accumulation kept). ---
    prepared_bf16 = prepare_dqn_params(params, compute_dtype=jnp.bfloat16)
    logits_bf16, _ = dqn_forward(obs, prepared_bf16, state=None)
    logits_bf16 = jax.block_until_ready(logits_bf16)
    assert logits_bf16.shape == (2, layer_sizes[-1])
    assert jnp.allclose(logits_bf16, ref_logits, atol=1e-1, rtol=5e-2), "bf16 mismatch vs reference"

    print("KERNEL_OK")
</pallas_src>

<mosaic_0001>
module attributes {stable_mosaic.version = 11 : i64} {
  func.func @kernel(%arg0: i32, %arg1: memref<8x64xf32, #tpu.memory_space<vmem>>, %arg2: memref<64x128xf32, #tpu.memory_space<vmem>>, %arg3: memref<1x128xf32, #tpu.memory_space<vmem>>, %arg4: memref<128x128xf32, #tpu.memory_space<vmem>>, %arg5: memref<1x128xf32, #tpu.memory_space<vmem>>, %arg6: memref<128x8xf32, #tpu.memory_space<vmem>>, %arg7: memref<1x8xf32, #tpu.memory_space<vmem>>, %arg8: memref<8x8xf32, #tpu.memory_space<vmem>>) attributes {dimension_semantics = [#tpu.dimension_semantics<parallel>], iteration_bounds = array<i64: 1>, scalar_prefetch = 0 : i64, scratch_operands = 0 : i64, tpu.core_type = #tpu.core_type<tc>, window_params = [{transform_indices = @transform_0, window_bounds = array<i64: 8, 64>}, {pipeline_mode = #tpu.pipeline_mode<synchronous>, transform_indices = @transform_1, window_bounds = array<i64: 64, 128>}, {pipeline_mode = #tpu.pipeline_mode<synchronous>, transform_indices = @transform_2, window_bounds = array<i64: 1, 128>}, {pipeline_mode = #tpu.pipeline_mode<synchronous>, transform_indices = @transform_3, window_bounds = array<i64: 128, 128>}, {pipeline_mode = #tpu.pipeline_mode<synchronous>, transform_indices = @transform_4, window_bounds = array<i64: 1, 128>}, {pipeline_mode = #tpu.pipeline_mode<synchronous>, transform_indices = @transform_5, window_bounds = array<i64: 128, 8>}, {pipeline_mode = #tpu.pipeline_mode<synchronous>, transform_indices = @transform_6, window_bounds = array<i64: 1, 8>}, {transform_indices = @transform_7, window_bounds = array<i64: 8, 8>}]} {
    %c0 = arith.constant 0 : index
    %c0_0 = arith.constant 0 : index
    %0 = vector.load %arg1[%c0, %c0_0] : memref<8x64xf32, #tpu.memory_space<vmem>>, vector<8x64xf32>
    %c0_1 = arith.constant 0 : index
    %c0_2 = arith.constant 0 : index
    %1 = vector.load %arg2[%c0_1, %c0_2] : memref<64x128xf32, #tpu.memory_space<vmem>>, vector<64x128xf32>
    %c0_3 = arith.constant 0 : index
    %c0_4 = arith.constant 0 : index
    %2 = vector.load %arg3[%c0_3, %c0_4] : memref<1x128xf32, #tpu.memory_space<vmem>>, vector<1x128xf32>
    %cst = arith.constant dense<0.000000e+00> : vector<8x128xf32>
    %3 = tpu.matmul %0, %1, %cst {dimension_numbers = #tpu.dot_dimension_numbers<[1], [0], [0], [1], [0, 0, 1, 1], [], []>} : vector<8x64xf32>, vector<64x128xf32>, vector<8x128xf32> -> vector<8x128xf32>
    %4 = vector.broadcast %2 : vector<1x128xf32> to vector<8x128xf32>
    %5 = arith.addf %3, %4 : vector<8x128xf32>
    %cst_5 = arith.constant 0.00999999977 : f32
    %6 = vector.broadcast %cst_5 : f32 to vector<8x128xf32>
    %7 = arith.mulf %6, %5 : vector<8x128xf32>
    %8 = arith.maximumf %5, %7 : vector<8x128xf32>
    %c0_6 = arith.constant 0 : index
    %c0_7 = arith.constant 0 : index
    %9 = vector.load %arg4[%c0_6, %c0_7] : memref<128x128xf32, #tpu.memory_space<vmem>>, vector<128x128xf32>
    %c0_8 = arith.constant 0 : index
    %c0_9 = arith.constant 0 : index
    %10 = vector.load %arg5[%c0_8, %c0_9] : memref<1x128xf32, #tpu.memory_space<vmem>>, vector<1x128xf32>
    %cst_10 = arith.constant dense<0.000000e+00> : vector<8x128xf32>
    %11 = tpu.matmul %8, %9, %cst_10 {dimension_numbers = #tpu.dot_dimension_numbers<[1], [0], [0], [1], [0, 0, 1, 1], [], []>} : vector<8x128xf32>, vector<128x128xf32>, vector<8x128xf32> -> vector<8x128xf32>
    %12 = vector.broadcast %10 : vector<1x128xf32> to vector<8x128xf32>
    %13 = arith.addf %11, %12 : vector<8x128xf32>
    %cst_11 = arith.constant 0.00999999977 : f32
    %14 = vector.broadcast %cst_11 : f32 to vector<8x128xf32>
    %15 = arith.mulf %14, %13 : vector<8x128xf32>
    %16 = arith.maximumf %13, %15 : vector<8x128xf32>
    %c0_12 = arith.constant 0 : index
    %c0_13 = arith.constant 0 : index
    %17 = vector.load %arg6[%c0_12, %c0_13] : memref<128x8xf32, #tpu.memory_space<vmem>>, vector<128x8xf32>
    %c0_14 = arith.constant 0 : index
    %c0_15 = arith.constant 0 : index
    %18 = vector.load %arg7[%c0_14, %c0_15] : memref<1x8xf32, #tpu.memory_space<vmem>>, vector<1x8xf32>
    %cst_16 = arith.constant dense<0.000000e+00> : vector<8x8xf32>
    %19 = tpu.matmul %16, %17, %cst_16 {dimension_numbers = #tpu.dot_dimension_numbers<[1], [0], [0], [1], [0, 0, 1, 1], [], []>} : vector<8x128xf32>, vector<128x8xf32>, vector<8x8xf32> -> vector<8x8xf32>
    %20 = vector.broadcast %18 : vector<1x8xf32> to vector<8x8xf32>
    %21 = arith.addf %19, %20 : vector<8x8xf32>
    %c0_17 = arith.constant 0 : index
    %c0_18 = arith.constant 0 : index
    %22 = vector.load %arg8[%c0_17, %c0_18] : memref<8x8xf32, #tpu.memory_space<vmem>>, vector<8x8xf32>
    tpu.vector_store %arg8[%c0_17, %c0_18], %21 {strides = array<i32>} : memref<8x8xf32, #tpu.memory_space<vmem>>, vector<8x8xf32>,
    return
  }
  func.func @transform_0(%arg0: i32) -> (i32, i32) {
    %c0_i32 = arith.constant 0 : i32
    %c0_i32_0 = arith.constant 0 : i32
    return %arg0, %c0_i32 : i32, i32
  }
  func.func @transform_1(%arg0: i32) -> (i32, i32) {
    %c0_i32 = arith.constant 0 : i32
    %c0_i32_0 = arith.constant 0 : i32
    %c0_i32_1 = arith.constant 0 : i32
    return %c0_i32, %c0_i32_0 : i32, i32
  }
  func.func @transform_2(%arg0: i32) -> (i32, i32) {
    %c0_i32 = arith.constant 0 : i32
    %c0_i32_0 = arith.constant 0 : i32
    %c0_i32_1 = arith.constant 0 : i32
    return %c0_i32, %c0_i32_0 : i32, i32
  }
  func.func @transform_3(%arg0: i32) -> (i32, i32) {
    %c0_i32 = arith.constant 0 : i32
    %c0_i32_0 = arith.constant 0 : i32
    %c0_i32_1 = arith.constant 0 : i32
    return %c0_i32, %c0_i32_0 : i32, i32
  }
  func.func @transform_4(%arg0: i32) -> (i32, i32) {
    %c0_i32 = arith.constant 0 : i32
    %c0_i32_0 = arith.constant 0 : i32
    %c0_i32_1 = arith.constant 0 : i32
    return %c0_i32, %c0_i32_0 : i32, i32
  }
  func.func @transform_5(%arg0: i32) -> (i32, i32) {
    %c0_i32 = arith.constant 0 : i32
    %c0_i32_0 = arith.constant 0 : i32
    %c0_i32_1 = arith.constant 0 : i32
    return %c0_i32, %c0_i32_0 : i32, i32
  }
  func.func @transform_6(%arg0: i32) -> (i32, i32) {
    %c0_i32 = arith.constant 0 : i32
    %c0_i32_0 = arith.constant 0 : i32
    %c0_i32_1 = arith.constant 0 : i32
    return %c0_i32, %c0_i32_0 : i32, i32
  }
  func.func @transform_7(%arg0: i32) -> (i32, i32) {
    %c0_i32 = arith.constant 0 : i32
    %c0_i32_0 = arith.constant 0 : i32
    return %arg0, %c0_i32 : i32, i32
  }
}

</mosaic_0001>

<bundles_post_ra>
// kernel: tpu_custom_call.1
= control target key start
LH: loop header
LB: loop body
LE: loop exit
PB: predicated region body
PF: predicated region fallthrough
CT: control target
= control target key end

     0   :  { %12 = vsyncpa [#allocation3], 0  ;;  %s767_s0 = inlined_call_operand.vmem [shape: f32[8,64], index: 0, kind: input, shape index: {}]   ;;  %s768_s1 = inlined_call_operand.hbm [shape: f32[64,128], index: 1, kind: input, shape index: {}]   ;;  %s769_s2 = inlined_call_operand.vmem [shape: f32[1,128], index: 2, kind: input, shape index: {}]   ;;  %s770_s3 = inlined_call_operand.vmem [shape: f32[128,128], index: 3, kind: input, shape index: {}]   ;;  %s771_s4 = inlined_call_operand.hbm [shape: f32[1,128], index: 4, kind: input, shape index: {}]   ;;  %s772_s5 = inlined_call_operand.vmem [shape: f32[128,8], index: 5, kind: input, shape index: {}]   ;;  %s773_s6 = inlined_call_operand.vmem [shape: f32[1,8], index: 6, kind: input, shape index: {}]   ;;  %s774_s7 = inlined_call_operand.hbm [shape: f32[8,8], index: 7, kind: output, shape index: {}]  }
   0x1   :  { %13 = vsyncpa [#allocation6], 0 }
   0x2   :  { %14 = vsyncpa [#allocation4], 0  ;;  %s560_s24 = smov [#allocation2]  }
   0x3   :  { %s22_s25 = sshll.u32 %s560_s24, 4  ;;  %s23_s25 = int_to_ptr.vmem [resolvable:$true] %s22_s25 }
   0x4   :  { %s502_s26 = scalar_lea.vmem %s23_s25, 1024  ;;  %p507_p1 = scmp.lt.s32.totalorder %s23_s25, %s23_s25 }
   0x5   :  { %p503_p0 = scmp.ne.s32.totalorder %s23_s25, %s502_s26  ;;  %p508_p2 = scmp.lt.s32.totalorder %s502_s26, %s502_s26 }
   0x7   :  { %p509_p3 = por %p508_p2, %p507_p1 }
   0x9   :  { %p510_p4 = pnand %p509_p3, %p503_p0 }
   0xb   :  { %513 = shalt.err (!%p510_p4)
}
   0xc   :  { %s561_s27 = smov 128   ;;  %s562_s28 = smov 8  }
   0xd   :  { %28 = dma.hbm_to_vmem [thread:$0]  %s768_s1, 1024, %s23_s25, [#allocation3], %s561_s27, %s561_s27, %s562_s28  }
   0xe   :  { %s563_s8 = smov [#allocation5]  }
   0xf   :  { %s39_s9 = sshll.u32 %s563_s8, 4  ;;  %s40_s9 = int_to_ptr.vmem [resolvable:$true] %s39_s9 }
  0x10   :  { %s522_s10 = scalar_lea.vmem %s40_s9, 16  ;;  %s526_s11 = scalar_lea.vmem %s40_s9, 32 }
  0x11   :  { %p523_p5 = scmp.ne.s32.totalorder %s40_s9, %s522_s10  ;;  %p527_p6 = scmp.lt.s32.totalorder %s40_s9, %s40_s9 }
  0x12   :  { %p528_p7 = scmp.lt.s32.totalorder %s526_s11, %s522_s10 }
  0x14   :  { %p529_p8 = por %p528_p7, %p527_p6 }
  0x16   :  { %p530_p9 = pnand %p529_p8, %p523_p5 }
  0x18   :  { %533 = shalt.err (!%p530_p9)
}
  0x19   :  { %42 = dma.hbm_to_vmem [thread:$0]  %s771_s4, 16, %s40_s9, [#allocation6]  }
  0x1a   :  { %554 = dma.done.wait [#allocation3], 1024  }
  0x1b   :  { %555 = vsyncadd [#allocation3], 4294966272 }
  0x1c   :  { %556 = dma.done.wait [#allocation6], 16  }
  0x1d   :  { %557 = vsyncadd [#allocation6], 4294967280  ;;  %v564_v0 = vmov 0.0   ;;  %vm565_vm0 = vmmov 0   ;;  %v61_v1 = vld [vmem:[#allocation2 + $0x38] sm:$0xff]  ;;  %v60_v2 = vld [vmem:[#allocation2 + $0x30] sm:$0xff] }
  0x1e   :  { %398 = vmatprep.subr.mxu0 %v564_v0  ;;  %414 = vmatprep.mubr.msk.f32.mxu0 %vm565_vm0, %v564_v0  ;;  %v59_v3 = vld [vmem:[#allocation2 + $0x28] sm:$0xff]  ;;  %v160_v4 = vld [vmem:[%s770_s3 + $0x78] sm:$0xff]  ;;  %v159_v5 = vld [vmem:[%s770_s3 + $0x70] sm:$0xff]  ;;  %vm69_vm1 = vcmask 523264   ;;  %s566_s27 = smov [#allocation7]   ;;  %vm333_vm2 = vcmask 64512  }
  0x1f   :  { %417 = vmatprep.subr.mxu1 %v564_v0  ;;  %449 = vmatprep.mubr.msk.f32.mxu1 %vm565_vm0, %v564_v0  ;;  %v58_v6 = vld [vmem:[#allocation2 + $0x20] sm:$0xff]  ;;  %v158_v7 = vld [vmem:[%s770_s3 + $0x68] sm:$0xff]  ;;  %v57_v8 = vld [vmem:[#allocation2 + $0x18] sm:$0xff]  ;;  %s341_s28 = sshll.u32 %s566_s27, 4  ;;  %s342_s28 = int_to_ptr.vmem [resolvable:$true] %s341_s28 }
  0x20   :  { %399 = vmatpush3.msra.mxu0 %v61_v1  ;;  %418 = vmatpush3.msra.mxu1 %v160_v4  ;;  %v157_v9 = vld [vmem:[%s770_s3 + $0x60] sm:$0xff]  ;;  %v56_v10 = vld [vmem:[#allocation2 + $0x10] sm:$0xff]  ;;  %v156_v11 = vld [vmem:[%s770_s3 + $0x58] sm:$0xff]  ;;  %p539_p11 = scmp.lt.s32.totalorder %s342_s28, %s342_s28 }
  0x21   :  { %400 = vmatprep.subr.mxu0 %v564_v0  ;;  %419 = vmatprep.subr.mxu1 %v564_v0  ;;  %v55_v12 = vld [vmem:[#allocation2 + $0x8] sm:$0xff]  ;;  %v155_v13 = vld [vmem:[%s770_s3 + $0x50] sm:$0xff]  ;;  %v54_v14 = vld [vmem:[#allocation2] sm:$0xff] }
  0x22   :  { %401 = vmatpush3.msra.mxu0 %v60_v2  ;;  %420 = vmatpush3.msra.mxu1 %v159_v5  ;;  %v53_v15 = vld [vmem:[%s767_s0] sm:$0xff]  ;;  %v154_v16 = vld [vmem:[%s770_s3 + $0x48] sm:$0xff]  ;;  %v152_v18 = vld [vmem:[%s770_s3 + $0x38] sm:$0xff] }
  0x23   :  { %402 = vmatprep.subr.mxu0 %v564_v0  ;;  %421 = vmatprep.subr.mxu1 %v564_v0  ;;  %v153_v17 = vld [vmem:[%s770_s3 + $0x40] sm:$0xff]  ;;  %v151_v19 = vld [vmem:[%s770_s3 + $0x30] sm:$0xff]  ;;  %v150_v20 = vld [vmem:[%s770_s3 + $0x28] sm:$0xff] }
  0x24   :  { %403 = vmatpush3.msra.mxu0 %v59_v3  ;;  %422 = vmatpush3.msra.mxu1 %v158_v7  ;;  %v149_v21 = vld [vmem:[%s770_s3 + $0x20] sm:$0xff]  ;;  %v148_v22 = vld [vmem:[%s770_s3 + $0x18] sm:$0xff]  ;;  %v147_v23 = vld [vmem:[%s770_s3 + $0x10] sm:$0xff] }
  0x25   :  { %404 = vmatprep.subr.mxu0 %v564_v0  ;;  %423 = vmatprep.subr.mxu1 %v564_v0  ;;  %v146_v24 = vld [vmem:[%s770_s3 + $0x8] sm:$0xff]  ;;  %v145_v25 = vld [vmem:[%s770_s3] sm:$0xff]  ;;  %v255_v26 = vld [vmem:[%s772_s5 + $0x78] sm:$0xff] }
  0x26   :  { %405 = vmatpush3.msra.mxu0 %v58_v6  ;;  %424 = vmatpush3.msra.mxu1 %v157_v9  ;;  %v254_v27 = vld [vmem:[%s772_s5 + $0x70] sm:$0xff]  ;;  %v253_v28 = vld [vmem:[%s772_s5 + $0x68] sm:$0xff]  ;;  %v252_v29 = vld [vmem:[%s772_s5 + $0x60] sm:$0xff] }
  0x27   :  { %406 = vmatprep.subr.mxu0 %v564_v0  ;;  %425 = vmatprep.subr.mxu1 %v564_v0  ;;  %v251_v30 = vld [vmem:[%s772_s5 + $0x58] sm:$0xff]  ;;  %v250_v31 = vld [vmem:[%s772_s5 + $0x50] sm:$0xff]  ;;  %v249_v32 = vld [vmem:[%s772_s5 + $0x48] sm:$0xff] }
  0x28   :  { %407 = vmatpush3.msra.mxu0 %v57_v8  ;;  %426 = vmatpush3.msra.mxu1 %v156_v11  ;;  %v248_v33 = vld [vmem:[%s772_s5 + $0x40] sm:$0xff]  ;;  %v247_v34 = vld [vmem:[%s772_s5 + $0x38] sm:$0xff]  ;;  %v246_v35 = vld [vmem:[%s772_s5 + $0x30] sm:$0xff] }
  0x29   :  { %408 = vmatprep.subr.mxu0 %v564_v0  ;;  %427 = vmatprep.subr.mxu1 %v564_v0  ;;  %v245_v36 = vld [vmem:[%s772_s5 + $0x28] sm:$0xff]  ;;  %v244_v37 = vld [vmem:[%s772_s5 + $0x20] sm:$0xff]  ;;  %v243_v44 = vld [vmem:[%s772_s5 + $0x18] sm:$0xff] }
  0x2a   :  { %409 = vmatpush3.msra.mxu0 %v56_v10  ;;  %428 = vmatpush3.msra.mxu1 %v155_v13  ;;  %v351_v38 = vld [vmem:[%s769_s2] ss:$0 sm:$0xff]  ;;  %v242_v45 = vld [vmem:[%s772_s5 + $0x10] sm:$0xff]  ;;  %v241_v46 = vld [vmem:[%s772_s5 + $0x8] sm:$0xff] }
  0x2b   :  { %410 = vmatprep.subr.mxu0 %v564_v0  ;;  %429 = vmatprep.subr.mxu1 %v564_v0  ;;  %v240_v47 = vld [vmem:[%s772_s5] sm:$0xff]  ;;  %s534_s5 = scalar_lea.vmem %s342_s28, 128 }
  0x2c   :  { %411 = vmatpush3.msra.mxu0 %v55_v12  ;;  %430 = vmatpush3.msra.mxu1 %v154_v16  ;;  %v353_v48 = vld [vmem:[#allocation5] ss:$0 sm:$0xff]  ;;  %p535_p10 = scmp.ne.s32.totalorder %s342_s28, %s534_s5  ;;  %p540_p12 = scmp.lt.s32.totalorder %s534_s5, %s534_s5 }
  0x2d   :  { %412 = vmatprep.subr.mxu0 %v564_v0  ;;  %431 = vmatprep.subr.mxu1 %v564_v0  ;;  %v354_v54 = vld [vmem:[%s773_s6] ss:$0 sm:$0xff] }
  0x2e   :  { %413 = vmatpush3.msra.mxu0 %v54_v14  ;;  %432 = vmatpush3.msra.mxu1 %v153_v17  ;;  %p541_p13 = por %p540_p12, %p539_p11 }
  0x2f   :  { %415 = vmatmul.mubr.msk.f32.vlgmr.msra.gmra.mxu0 %vm69_vm1, %v53_v15  ;;  %452 = vmatprep.subr.mxu0 %v564_v0 }
  0x30   :  { %484 = vmatprep.mubr.msk.f32.mxu0 %vm565_vm0, %v564_v0  ;;  %433 = vmatprep.subr.mxu1 %v564_v0  ;;  %p542_p0 = pnand %p541_p13, %p535_p10 }
  0x31   :  { %434 = vmatpush3.msra.mxu1 %v152_v18  ;;  %453 = vmatpush3.msra.mxu0 %v255_v26 }
  0x32   :  { %435 = vmatprep.subr.mxu1 %v564_v0  ;;  %454 = vmatprep.subr.mxu0 %v564_v0 }
  0x33   :  { %436 = vmatpush3.msra.mxu1 %v151_v19  ;;  %455 = vmatpush3.msra.mxu0 %v254_v27 }
  0x34   :  { %437 = vmatprep.subr.mxu1 %v564_v0  ;;  %456 = vmatprep.subr.mxu0 %v564_v0 }
  0x35   :  { %438 = vmatpush3.msra.mxu1 %v150_v20  ;;  %457 = vmatpush3.msra.mxu0 %v253_v28 }
  0x36   :  { %439 = vmatprep.subr.mxu1 %v564_v0  ;;  %458 = vmatprep.subr.mxu0 %v564_v0 }
  0x37   :  { %440 = vmatpush3.msra.mxu1 %v149_v21  ;;  %459 = vmatpush3.msra.mxu0 %v252_v29 }
  0x38   :  { %441 = vmatprep.subr.mxu1 %v564_v0  ;;  %460 = vmatprep.subr.mxu0 %v564_v0 }
  0x39   :  { %442 = vmatpush3.msra.mxu1 %v148_v22  ;;  %461 = vmatpush3.msra.mxu0 %v251_v30 }
  0x3a   :  { %443 = vmatprep.subr.mxu1 %v564_v0  ;;  %462 = vmatprep.subr.mxu0 %v564_v0 }
  0x3b   :  { %444 = vmatpush3.msra.mxu1 %v147_v23  ;;  %463 = vmatpush3.msra.mxu0 %v250_v31 }
  0x3c   :  { %445 = vmatprep.subr.mxu1 %v564_v0  ;;  %464 = vmatprep.subr.mxu0 %v564_v0 }
  0x3d   :  { %446 = vmatpush3.msra.mxu1 %v146_v24  ;;  %465 = vmatpush3.msra.mxu0 %v249_v32 }
  0x3e   :  { %447 = vmatprep.subr.mxu1 %v564_v0  ;;  %466 = vmatprep.subr.mxu0 %v564_v0 }
  0x3f   :  { %448 = vmatpush3.msra.mxu1 %v145_v25  ;;  %467 = vmatpush3.msra.mxu0 %v248_v33 }
  0x40   :  { %468 = vmatprep.subr.mxu0 %v564_v0 }
  0x41   :  { %469 = vmatpush3.msra.mxu0 %v247_v34 }
  0x42   :  { %470 = vmatprep.subr.mxu0 %v564_v0 }
  0x43   :  { %471 = vmatpush3.msra.mxu0 %v246_v35 }
  0x44   :  { %472 = vmatprep.subr.mxu0 %v564_v0 }
  0x45   :  { %473 = vmatpush3.msra.mxu0 %v245_v36 }
  0x46   :  { %474 = vmatprep.subr.mxu0 %v564_v0 }
  0x47   :  { %475 = vmatpush3.msra.mxu0 %v244_v37 }
  0x48   :  { %476 = vmatprep.subr.mxu0 %v564_v0 }
  0x49   :  { %477 = vmatpush3.msra.mxu0 %v243_v44 }
  0x4a   :  { %478 = vmatprep.subr.mxu0 %v564_v0 }
  0x4b   :  { %479 = vmatpush3.msra.mxu0 %v242_v45 }
  0x4c   :  { %480 = vmatprep.subr.mxu0 %v564_v0 }
  0x4d   :  { %481 = vmatpush3.msra.mxu0 %v241_v46 }
  0x4e   :  { %482 = vmatprep.subr.mxu0 %v564_v0 }
  0x4f   :  { %483 = vmatpush3.msra.mxu0 %v240_v47 }
  0xef   :  { %v139_v39 = vpop.f32.mrf.mxu0 }
  0xf0   :  { %v140_v40 = vadd.f32 %v351_v38, %v139_v39 }
  0xf1   :  { %v416_v41 = vpop.f32.mrf.mxu0 }
  0xf2   :  { %v143_v42 = vmul.f32 0.01, %v140_v40 }
  0xf4   :  { %v144_v43 = vmax.f32 %v140_v40, %v143_v42 }
  0xf6   :  { %450 = vmatmul.mubr.f32.vlgmr.msra.gmra.mxu1 %v144_v43 }
 0x1b6   :  { %v234_v49 = vpop.f32.mrf.mxu1 }
 0x1b7   :  { %v235_v50 = vadd.f32 %v353_v48, %v234_v49 }
 0x1b8   :  { %v451_v51 = vpop.f32.mrf.mxu1 }
 0x1b9   :  { %v238_v52 = vmul.f32 0.01, %v235_v50 }
 0x1bb   :  { %v239_v53 = vmax.f32 %v235_v50, %v238_v52 }
 0x1bd   :  { %485 = vmatmul.mubr.f32.vlgmr.msra.gmra.mxu0 %v239_v53 }
 0x27d   :  { %v329_v55 = vpop.f32.mrf.mxu0 }
 0x27e   :  { %v330_v56 = vadd.f32 %v354_v54, %v329_v55 }
 0x27f   :  { %v486_v57 = vpop.f32.mrf.mxu0 }
 0x280   :  { %334 = vst.msk [vmem:[#allocation7] sm:$0xff] %vm333_vm2, %v330_v56 }
 0x281   :  { %545 = shalt.err (!%p542_p0)
}
 0x282   :  { %344 = dma.vmem_to_hbm [thread:$0]  %s342_s28, 128, %s774_s7, [#allocation4]  }
 0x283   :  { %558 = dma.done.wait [#allocation4], 128  }
 0x284   :  { %559 = vsyncadd [#allocation4], 4294967168 }
 0x285   :  { %348 = vsyncpa [#allocation3], 1 }
 0x286   :  { %349 = vsyncpa [#allocation6], 1 }
 0x287   :  { %350 = vsyncpa [#allocation4], 1 }

</bundles_post_ra>
